<compile_context>
chip_gen: v5e
topology: v5e:2x2
jax: 0.10.0
libtpu: 0.0.40
codegen_flags: <defaults>
</compile_context>

<pallas_src>
import functools
import math

import jax
import jax.numpy as jnp
from jax.experimental import pallas as pl
from jax.experimental.pallas import tpu as pltpu

ALPHA = 0.25


def _log_sigmoid(z):
    # Numerically stable log(sigmoid(z)) = min(z, 0) - log(1 + exp(-|z|)).
    return jnp.minimum(z, 0.0) - jnp.log(1.0 + jnp.exp(-jnp.abs(z)))


def _num_tensorcores():
    """Best-effort TensorCores-per-chip count (2 on megacore parts, else 1)."""
    try:
        dev = jax.devices()[0]
    except Exception:
        return 1
    for attr in ("num_cores", "core_count", "num_tensorcores"):
        n = getattr(dev, attr, None)
        if isinstance(n, int) and 0 < n <= 8:
            return n
    kind = str(getattr(dev, "device_kind", "")).lower()
    if any(tag in kind for tag in ("v7", "v5p", "v4")):
        return 2
    return 1


def _focal_kernel(cls_ref, locp_ref, loct_ref, lab_ref,
                  ecls_ref, crow_ref, eloc_ref,
                  o_cls_ref, o_loc_ref, o_png_ref, o_pos_ref,
                  acc_cls, acc_loc, acc_png, acc_pos,
                  *, n_rows):
    """Accumulates masked focal / smooth-L1 partials into VMEM scratch and
    collapses them to scalars at the last grid step.

    cls_ref  : (TR, G*C) logits (any float dtype), G anchors packed per row
    locp_ref : (TR, 4*G) predicted boxes, lane-dense
    loct_ref : (TR, 4*G) target boxes
    lab_ref  : (TR, G)   labels in {-1, 0, 1..C}
    ecls_ref : (G, G*C)  f32 0/1 "repeat each label C times" expansion matrix
    crow_ref : (1, G*C)  f32 class id (1..C) of each class-matrix lane
    eloc_ref : (G, 4*G)  f32 0/1 "repeat each label 4 times" expansion matrix
    o_*_ref  : (8, 128)  per-split outputs; scalar sum written at [0, 0]
    acc_*    : VMEM scratch accumulators (persist across the sequential axis)
    """
    c = pl.program_id(0)          # parallel split (megacore on v7x)
    i = pl.program_id(1)          # sequential tile index within the split
    k = pl.num_programs(1)

    @pl.when(i == 0)
    def _init():
        acc_cls[...] = jnp.zeros_like(acc_cls)
        acc_loc[...] = jnp.zeros_like(acc_loc)
        acc_png[...] = jnp.zeros_like(acc_png)
        acc_pos[...] = jnp.zeros_like(acc_pos)

    tr = lab_ref.shape[0]
    row0 = (c * k + i) * tr                                   # unclamped tile base
    row_ids = jax.lax.broadcasted_iota(jnp.int32, (tr, 1), 0) + row0

    # Rows past the real extent (partial last tile, or the duplicated clamped
    # tiles created by the parallel split) get the "ignore" label so every mask
    # below switches them off; their (possibly garbage) data is removed with
    # jnp.where selects -- never via 0 * maybe-NaN.
    lab = jnp.where(row_ids < n_rows, lab_ref[...].astype(jnp.float32), -1.0)

    # Per-anchor counts (label > 0 and label > -1).
    acc_pos[...] += (lab > 0.5).astype(jnp.float32)
    acc_png[...] += (lab > -0.5).astype(jnp.float32)

    # ---- classification (focal_loss_alt) term, lane-dense (TR, G*C) ----
    x = cls_ref[...].astype(jnp.float32)
    # Expand per-anchor labels to per-(anchor, class) lanes on the idle MXU.
    lab_e = jnp.dot(lab, ecls_ref[...], preferred_element_type=jnp.float32)
    t = jnp.abs(lab_e - crow_ref[...]) < 0.5                  # one_hot(y,1+C)[:,1:]
    png_e = lab_e > -0.5                                      # anchors with label > -1
    u = 2.0 * x
    z = jnp.where(t, u + 1.0, 1.0 - u)                        # 2*x*(2t-1) + 1
    coef = jnp.where(t, -0.125, -0.375)                       # -(alpha*t+(1-a)(1-t))/2
    acc_cls[...] += jnp.where(png_e, coef * _log_sigmoid(z), 0.0)

    # ---- localization (smooth-L1) term, lane-dense (TR, 4*G) ----
    d = locp_ref[...].astype(jnp.float32) - loct_ref[...].astype(jnp.float32)
    ad = jnp.abs(d)
    sl1 = jnp.where(ad < 1.0, 0.5 * d * d, ad - 0.5)
    pos_e = jnp.dot(lab, eloc_ref[...],
                    preferred_element_type=jnp.float32) > 0.5  # anchors with label > 0
    acc_loc[...] += jnp.where(pos_e, sl1, 0.0)

    # ---- last step: collapse the accumulators to scalars (XLU is idle) ----
    @pl.when(i == k - 1)
    def _finalize():
        rows = jax.lax.broadcasted_iota(jnp.int32, o_cls_ref.shape, 0)
        cols = jax.lax.broadcasted_iota(jnp.int32, o_cls_ref.shape, 1)
        first = (rows == 0) & (cols == 0)
        o_cls_ref[...] = jnp.where(first, jnp.sum(acc_cls[...]), 0.0)
        o_loc_ref[...] = jnp.where(first, jnp.sum(acc_loc[...]), 0.0)
        o_png_ref[...] = jnp.where(first, jnp.sum(acc_png[...]), 0.0)
        o_pos_ref[...] = jnp.where(first, jnp.sum(acc_pos[...]), 0.0)


@functools.partial(jax.jit, static_argnames=("num_classes", "tile_anchors"))
def focal_loss_forward(classifications, regressions, anchors, gt_clss, gt_bboxes,
                       num_classes=20, tile_anchors=32768):
    """Returns (cls_loss, loc_loss / num_pos), matching FocalLoss.forward."""
    del anchors  # not used by the reference forward
    C = num_classes
    B = gt_clss.shape[0]
    y2d = gt_clss.reshape(B, -1).astype(jnp.float32)          # [B, A] (tiny traffic)
    A = y2d.shape[1]
    N = B * A

    # Stream the big tensors in their native dtype (bf16 upstream -> bf16 DMA);
    # the kernel casts to f32 after the load.
    cls_nc = classifications.reshape(N, C)
    locp_n4 = regressions.reshape(N, 4)
    loct_n4 = gt_bboxes.reshape(N, 4)
    y_n = y2d.reshape(N)

    # Pack G anchors per row so that the class matrix (G*C lanes) and the box
    # matrix (4*G lanes) are multiples of 128 lanes (fully lane-dense vregs).
    G = 128 // math.gcd(C, 128)
    G = (G * 32) // math.gcd(G, 32)          # lcm(G, 32): keeps 4*G lane-aligned
    N_main = (N // G) * G
    R = N_main // G                          # packed rows handled by the kernel
    tail = N - N_main                        # < G anchors handled in plain JAX

    focal_sum = jnp.float32(0.0)
    sl1_sum = jnp.float32(0.0)
    png_cnt = jnp.float32(0.0)
    pos_cnt = jnp.float32(0.0)

    if R > 0:
        # Packed rows per grid step. Large tiles amortize the ~0.35us/step
        # pipeline overhead; cap so double-buffered inputs + f32 scratch
        # accumulators stay under ~24 MiB/core (v7x has 64 MiB physical VMEM).
        TR = max(16, (tile_anchors // G) // 16 * 16)
        bytes_per_row = 12 * G * C + 96 * G          # 2x-buffered inputs + scratch
        TR = min(TR, max(16, ((24 << 20) // bytes_per_row) // 16 * 16))
        TR = min(TR, ((R + 15) // 16) * 16)          # no bigger than the data

        total_tiles = pl.cdiv(R, TR)
        nsplit = max(1, min(_num_tensorcores(), total_tiles))  # 2 only on megacore
        K = pl.cdiv(total_tiles, nsplit)

        cls2d = cls_nc[:N_main].reshape(R, G * C)
        locp2d = locp_n4[:N_main].reshape(R, 4 * G)
        loct2d = loct_n4[:N_main].reshape(R, 4 * G)
        lab2d = y_n[:N_main].reshape(R, G)

        # Tiny constants used to rebuild the one-hot / masks in-kernel.
        lane = jnp.arange(G * C, dtype=jnp.int32)
        grp = jnp.arange(G, dtype=jnp.int32)
        e_cls = (lane[None, :] // C == grp[:, None]).astype(jnp.float32)   # (G, G*C)
        crow = (lane % C + 1).astype(jnp.float32)[None, :]                 # (1, G*C)
        lane4 = jnp.arange(4 * G, dtype=jnp.int32)
        e_loc = (lane4[None, :] // 4 == grp[:, None]).astype(jnp.float32)  # (G, 4*G)

        def data_map(c, i):
            # Clamp so a DMA never starts past the array; the duplicated tiles
            # this creates are neutralized in-kernel via the row mask.
            return (jnp.minimum(c * K + i, total_tiles - 1), 0)

        def const_map(c, i):
            return (0, 0)

        def out_map(c, i):
            return (c, 0)

        o_cls, o_loc, o_png, o_pos = pl.pallas_call(
            functools.partial(_focal_kernel, n_rows=R),
            out_shape=tuple(jax.ShapeDtypeStruct((nsplit * 8, 128), jnp.float32)
                            for _ in range(4)),
            grid=(nsplit, K),
            in_specs=[
                pl.BlockSpec((TR, G * C), data_map),
                pl.BlockSpec((TR, 4 * G), data_map),
                pl.BlockSpec((TR, 4 * G), data_map),
                pl.BlockSpec((TR, G), data_map),
                pl.BlockSpec((G, G * C), const_map),
                pl.BlockSpec((1, G * C), const_map),
                pl.BlockSpec((G, 4 * G), const_map),
            ],
            out_specs=tuple(pl.BlockSpec((8, 128), out_map) for _ in range(4)),
            scratch_shapes=[
                pltpu.VMEM((TR, G * C), jnp.float32),   # focal accumulator
                pltpu.VMEM((TR, 4 * G), jnp.float32),   # smooth-L1 accumulator
                pltpu.VMEM((TR, G), jnp.float32),       # pos_neg count
                pltpu.VMEM((TR, G), jnp.float32),       # pos count
            ],
            compiler_params=pltpu.CompilerParams(
                dimension_semantics=("parallel", "arbitrary"),
                vmem_limit_bytes=32 * 1024 * 1024),
        )(cls2d, locp2d, loct2d, lab2d, e_cls, crow, e_loc)

        # Tiny (nsplit*8, 128) outputs: the only nonzero entries are the
        # per-split scalar sums, so a plain jnp.sum finishes the job.
        focal_sum = focal_sum + jnp.sum(o_cls)
        sl1_sum = sl1_sum + jnp.sum(o_loc)
        png_cnt = png_cnt + jnp.sum(o_png)
        pos_cnt = pos_cnt + jnp.sum(o_pos)

    if tail > 0:
        # < G leftover anchors: negligible work, done in plain JAX (avoids
        # padding the big tensors just for the remainder).
        y_t = y_n[N_main:]
        pos_t = y_t > 0.5
        png_t = y_t > -0.5
        x_t = cls_nc[N_main:].astype(jnp.float32)
        t_t = (y_t[:, None] ==
               (jnp.arange(C, dtype=jnp.float32) + 1.0)[None, :]).astype(jnp.float32)
        z_t = 2.0 * x_t * (2.0 * t_t - 1.0) + 1.0
        w_t = 0.75 - 0.5 * t_t
        focal_t = jnp.where(png_t[:, None], -0.5 * w_t * _log_sigmoid(z_t), 0.0)
        d_t = locp_n4[N_main:].astype(jnp.float32) - loct_n4[N_main:].astype(jnp.float32)
        ad_t = jnp.abs(d_t)
        sl1_t = jnp.where(ad_t < 1.0, 0.5 * d_t * d_t, ad_t - 0.5)
        focal_sum = focal_sum + jnp.sum(focal_t)
        sl1_sum = sl1_sum + jnp.sum(jnp.where(pos_t[:, None], sl1_t, 0.0))
        png_cnt = png_cnt + jnp.sum(png_t.astype(jnp.float32))
        pos_cnt = pos_cnt + jnp.sum(pos_t.astype(jnp.float32))

    # focal_loss_alt is a mean over the masked [num_posneg, C] matrix;
    # smooth_l1_loss(size_average=False) is a sum, normalized by num_pos.
    # (No zero-guard, matching the PyTorch reference semantics.)
    cls_loss = focal_sum / (png_cnt * C)
    loc_loss = sl1_sum
    return cls_loss, loc_loss / pos_cnt


def _reference_jax(classifications, regressions, gt_clss, gt_bboxes, num_classes):
    """Pure-JAX reference mirroring the PyTorch math (for sanity checking)."""
    B = gt_clss.shape[0]
    y = gt_clss.reshape(B, -1).astype(jnp.int32)
    C = num_classes
    pos = y > 0
    pos_neg = y > -1
    num_pos = jnp.sum(pos).astype(jnp.float32)

    d = regressions.astype(jnp.float32) - gt_bboxes.astype(jnp.float32)
    ad = jnp.abs(d)
    sl1 = jnp.where(ad < 1.0, 0.5 * d * d, ad - 0.5)
    loc_loss = jnp.sum(sl1 * pos[..., None])

    t = (y[..., None] == (jnp.arange(C) + 1)[None, None, :]).astype(jnp.float32)
    x = classifications.astype(jnp.float32)
    xt = x * (2.0 * t - 1.0)
    pt = jax.nn.sigmoid(2.0 * xt + 1.0)
    w = ALPHA * t + (1.0 - ALPHA) * (1.0 - t)
    focal = -w * jnp.log(pt) * 0.5
    m = jnp.sum(pos_neg).astype(jnp.float32)
    cls_loss = jnp.sum(focal * pos_neg[..., None].astype(jnp.float32)) / (m * C)
    return cls_loss, loc_loss / num_pos


if __name__ == "__main__":
    B, A, C = 2, 1234, 20  # batch, anchors, num_classes
    key = jax.random.PRNGKey(0)
    k1, k2, k3, k4, k5 = jax.random.split(key, 5)

    classifications = jax.random.normal(k1, (B, A, C), dtype=jnp.float32)
    regressions = jax.random.normal(k2, (B, A, 4), dtype=jnp.float32)
    anchors = jax.random.normal(k3, (B, A, 4), dtype=jnp.float32)
    gt_bboxes = jax.random.normal(k4, (B, A, 4), dtype=jnp.float32)
    # labels in {-1 (ignore), 0 (background), 1..C}; force at least one positive
    gt_clss = jax.random.randint(k5, (B, A), -1, C + 1, dtype=jnp.int32)
    gt_clss = gt_clss.at[0, 0].set(3)

    # Small tile for the demo so several grid steps, the megacore split (if the
    # chip has 2 TensorCores), a partial last tile and the <G anchor tail path
    # are all exercised.  Production default is tile_anchors=32768.
    cls_loss, loc_loss = focal_loss_forward(
        classifications, regressions, anchors, gt_clss, gt_bboxes,
        num_classes=C, tile_anchors=256)
    cls_loss = jax.block_until_ready(cls_loss)
    loc_loss = jax.block_until_ready(loc_loss)

    ref_cls, ref_loc = _reference_jax(classifications, regressions, gt_clss,
                                      gt_bboxes, C)
    assert bool(jnp.isfinite(cls_loss)) and bool(jnp.isfinite(loc_loss))
    assert jnp.allclose(cls_loss, ref_cls, rtol=5e-4, atol=1e-6), (cls_loss, ref_cls)
    assert jnp.allclose(loc_loss, ref_loc, rtol=5e-4, atol=1e-6), (loc_loss, ref_loc)

    # bf16 streaming path (halves HBM traffic): inputs pass through the
    # BlockSpecs as bf16 and are cast to f32 inside the kernel.
    cls_b, loc_b = focal_loss_forward(
        classifications.astype(jnp.bfloat16), regressions.astype(jnp.bfloat16),
        anchors, gt_clss, gt_bboxes.astype(jnp.bfloat16),
        num_classes=C, tile_anchors=256)
    cls_b = jax.block_until_ready(cls_b)
    loc_b = jax.block_until_ready(loc_b)
    assert bool(jnp.isfinite(cls_b)) and bool(jnp.isfinite(loc_b))
    assert jnp.allclose(cls_b, ref_cls, rtol=2e-2, atol=1e-4), (cls_b, ref_cls)
    assert jnp.allclose(loc_b, ref_loc, rtol=2e-2, atol=1e-4), (loc_b, ref_loc)

    print("KERNEL_OK")
</pallas_src>

<mosaic_0001>
module attributes {stable_mosaic.version = 11 : i64} {
  func.func @_focal_kernel(%arg0: i32, %arg1: i32, %arg2: memref<16x640xf32, #tpu.memory_space<vmem>>, %arg3: memref<16x128xf32, #tpu.memory_space<vmem>>, %arg4: memref<16x128xf32, #tpu.memory_space<vmem>>, %arg5: memref<16x32xf32, #tpu.memory_space<vmem>>, %arg6: memref<32x640xf32, #tpu.memory_space<vmem>>, %arg7: memref<1x640xf32, #tpu.memory_space<vmem>>, %arg8: memref<32x128xf32, #tpu.memory_space<vmem>>, %arg9: memref<8x128xf32, #tpu.memory_space<vmem>>, %arg10: memref<8x128xf32, #tpu.memory_space<vmem>>, %arg11: memref<8x128xf32, #tpu.memory_space<vmem>>, %arg12: memref<8x128xf32, #tpu.memory_space<vmem>>, %arg13: memref<16x640xf32, #tpu.memory_space<vmem>>, %arg14: memref<16x128xf32, #tpu.memory_space<vmem>>, %arg15: memref<16x32xf32, #tpu.memory_space<vmem>>, %arg16: memref<16x32xf32, #tpu.memory_space<vmem>>) attributes {dimension_semantics = [#tpu.dimension_semantics<parallel>, #tpu.dimension_semantics<arbitrary>], iteration_bounds = array<i64: 1, 5>, scalar_prefetch = 0 : i64, scratch_operands = 4 : i64, tpu.core_type = #tpu.core_type<tc>, window_params = [{transform_indices = @transform_0, window_bounds = array<i64: 16, 640>}, {transform_indices = @transform_1, window_bounds = array<i64: 16, 128>}, {transform_indices = @transform_2, window_bounds = array<i64: 16, 128>}, {transform_indices = @transform_3, window_bounds = array<i64: 16, 32>}, {pipeline_mode = #tpu.pipeline_mode<synchronous>, transform_indices = @transform_4, window_bounds = array<i64: 32, 640>}, {pipeline_mode = #tpu.pipeline_mode<synchronous>, transform_indices = @transform_5, window_bounds = array<i64: 1, 640>}, {pipeline_mode = #tpu.pipeline_mode<synchronous>, transform_indices = @transform_6, window_bounds = array<i64: 32, 128>}, {transform_indices = @transform_7, window_bounds = array<i64: 8, 128>}, {transform_indices = @transform_8, window_bounds = array<i64: 8, 128>}, {transform_indices = @transform_9, window_bounds = array<i64: 8, 128>}, {transform_indices = @transform_10, window_bounds = array<i64: 8, 128>}]} {
    %c0_i32 = arith.constant 0 : i32
    %0 = arith.cmpi eq, %arg1, %c0_i32 : i32
    %1 = arith.extui %0 : i1 to i32
    %c0_i32_0 = arith.constant 0 : i32
    %2 = arith.cmpi ne, %1, %c0_i32_0 : i32
    scf.if %2 {
      %cst_51 = arith.constant 0.000000e+00 : f32
      %91 = vector.broadcast %cst_51 : f32 to vector<16x640xf32>
      %c0_52 = arith.constant 0 : index
      %c0_53 = arith.constant 0 : index
      %92 = vector.load %arg13[%c0_52, %c0_53] : memref<16x640xf32, #tpu.memory_space<vmem>>, vector<16x640xf32>
      tpu.vector_store %arg13[%c0_52, %c0_53], %91 {strides = array<i32>} : memref<16x640xf32, #tpu.memory_space<vmem>>, vector<16x640xf32>,
      %cst_54 = arith.constant 0.000000e+00 : f32
      %93 = vector.broadcast %cst_54 : f32 to vector<16x128xf32>
      %c0_55 = arith.constant 0 : index
      %c0_56 = arith.constant 0 : index
      %94 = vector.load %arg14[%c0_55, %c0_56] : memref<16x128xf32, #tpu.memory_space<vmem>>, vector<16x128xf32>
      tpu.vector_store %arg14[%c0_55, %c0_56], %93 {strides = array<i32>} : memref<16x128xf32, #tpu.memory_space<vmem>>, vector<16x128xf32>,
      %cst_57 = arith.constant 0.000000e+00 : f32
      %95 = vector.broadcast %cst_57 : f32 to vector<16x32xf32>
      %c0_58 = arith.constant 0 : index
      %c0_59 = arith.constant 0 : index
      %96 = vector.load %arg15[%c0_58, %c0_59] : memref<16x32xf32, #tpu.memory_space<vmem>>, vector<16x32xf32>
      tpu.vector_store %arg15[%c0_58, %c0_59], %95 {strides = array<i32>} : memref<16x32xf32, #tpu.memory_space<vmem>>, vector<16x32xf32>,
      %cst_60 = arith.constant 0.000000e+00 : f32
      %97 = vector.broadcast %cst_60 : f32 to vector<16x32xf32>
      %c0_61 = arith.constant 0 : index
      %c0_62 = arith.constant 0 : index
      %98 = vector.load %arg16[%c0_61, %c0_62] : memref<16x32xf32, #tpu.memory_space<vmem>>, vector<16x32xf32>
      tpu.vector_store %arg16[%c0_61, %c0_62], %97 {strides = array<i32>} : memref<16x32xf32, #tpu.memory_space<vmem>>, vector<16x32xf32>,
    } else {
    }
    %c5_i32 = arith.constant 5 : i32
    %3 = arith.muli %arg0, %c5_i32 : i32
    %4 = arith.addi %3, %arg1 : i32
    %c16_i32 = arith.constant 16 : i32
    %5 = arith.muli %4, %c16_i32 : i32
    %6 = tpu.iota {dimensions = array<i32: 0>} : vector<16x1xi32>
    %7 = vector.broadcast %5 : i32 to vector<16x1xi32>
    %8 = arith.addi %6, %7 : vector<16x1xi32>
    %c77_i32 = arith.constant 77 : i32
    %9 = vector.broadcast %c77_i32 : i32 to vector<16x1xi32>
    %10 = arith.cmpi slt, %8, %9 : vector<16x1xi32>
    %c0 = arith.constant 0 : index
    %c0_1 = arith.constant 0 : index
    %11 = vector.load %arg5[%c0, %c0_1] : memref<16x32xf32, #tpu.memory_space<vmem>>, vector<16x32xf32>
    %cst = arith.constant -1.000000e+00 : f32
    %12 = vector.shape_cast %10 : vector<16x1xi1> to vector<16x1xi1>
    %13 = vector.broadcast %12 : vector<16x1xi1> to vector<16x32xi1>
    %14 = vector.broadcast %cst : f32 to vector<16x32xf32>
    %15 = arith.select %13, %11, %14 : vector<16x32xi1>, vector<16x32xf32>
    %c0_2 = arith.constant 0 : index
    %c0_3 = arith.constant 0 : index
    %16 = vector.load %arg16[%c0_2, %c0_3] : memref<16x32xf32, #tpu.memory_space<vmem>>, vector<16x32xf32>
    %cst_4 = arith.constant 5.000000e-01 : f32
    %17 = vector.broadcast %cst_4 : f32 to vector<16x32xf32>
    %18 = arith.cmpf ogt, %15, %17 : vector<16x32xf32>
    %19 = arith.extui %18 : vector<16x32xi1> to vector<16x32xi32>
    %20 = arith.sitofp %19 : vector<16x32xi32> to vector<16x32xf32>
    %21 = arith.addf %16, %20 : vector<16x32xf32>
    %c0_5 = arith.constant 0 : index
    %c0_6 = arith.constant 0 : index
    %22 = vector.load %arg16[%c0_5, %c0_6] : memref<16x32xf32, #tpu.memory_space<vmem>>, vector<16x32xf32>
    tpu.vector_store %arg16[%c0_5, %c0_6], %21 {strides = array<i32>} : memref<16x32xf32, #tpu.memory_space<vmem>>, vector<16x32xf32>,
    %c0_7 = arith.constant 0 : index
    %c0_8 = arith.constant 0 : index
    %23 = vector.load %arg15[%c0_7, %c0_8] : memref<16x32xf32, #tpu.memory_space<vmem>>, vector<16x32xf32>
    %cst_9 = arith.constant -5.000000e-01 : f32
    %24 = vector.broadcast %cst_9 : f32 to vector<16x32xf32>
    %25 = arith.cmpf ogt, %15, %24 : vector<16x32xf32>
    %26 = arith.extui %25 : vector<16x32xi1> to vector<16x32xi32>
    %27 = arith.sitofp %26 : vector<16x32xi32> to vector<16x32xf32>
    %28 = arith.addf %23, %27 : vector<16x32xf32>
    %c0_10 = arith.constant 0 : index
    %c0_11 = arith.constant 0 : index
    %29 = vector.load %arg15[%c0_10, %c0_11] : memref<16x32xf32, #tpu.memory_space<vmem>>, vector<16x32xf32>
    tpu.vector_store %arg15[%c0_10, %c0_11], %28 {strides = array<i32>} : memref<16x32xf32, #tpu.memory_space<vmem>>, vector<16x32xf32>,
    %c0_12 = arith.constant 0 : index
    %c0_13 = arith.constant 0 : index
    %30 = vector.load %arg2[%c0_12, %c0_13] : memref<16x640xf32, #tpu.memory_space<vmem>>, vector<16x640xf32>
    %c0_14 = arith.constant 0 : index
    %c0_15 = arith.constant 0 : index
    %31 = vector.load %arg6[%c0_14, %c0_15] : memref<32x640xf32, #tpu.memory_space<vmem>>, vector<32x640xf32>
    %cst_16 = arith.constant dense<0.000000e+00> : vector<16x640xf32>
    %32 = tpu.matmul %15, %31, %cst_16 {dimension_numbers = #tpu.dot_dimension_numbers<[1], [0], [0], [1], [0, 0, 1, 1], [], []>} : vector<16x32xf32>, vector<32x640xf32>, vector<16x640xf32> -> vector<16x640xf32>
    %c0_17 = arith.constant 0 : index
    %c0_18 = arith.constant 0 : index
    %33 = vector.load %arg7[%c0_17, %c0_18] : memref<1x640xf32, #tpu.memory_space<vmem>>, vector<1x640xf32>
    %34 = vector.broadcast %33 : vector<1x640xf32> to vector<16x640xf32>
    %35 = arith.subf %32, %34 : vector<16x640xf32>
    %36 = math.absf %35 : vector<16x640xf32>
    %cst_19 = arith.constant 5.000000e-01 : f32
    %37 = vector.broadcast %cst_19 : f32 to vector<16x640xf32>
    %38 = arith.cmpf olt, %36, %37 : vector<16x640xf32>
    %cst_20 = arith.constant -5.000000e-01 : f32
    %39 = vector.broadcast %cst_20 : f32 to vector<16x640xf32>
    %40 = arith.cmpf ogt, %32, %39 : vector<16x640xf32>
    %cst_21 = arith.constant 2.000000e+00 : f32
    %41 = vector.broadcast %cst_21 : f32 to vector<16x640xf32>
    %42 = arith.mulf %41, %30 : vector<16x640xf32>
    %cst_22 = arith.constant 1.000000e+00 : f32
    %43 = vector.broadcast %cst_22 : f32 to vector<16x640xf32>
    %44 = arith.addf %42, %43 : vector<16x640xf32>
    %cst_23 = arith.constant 1.000000e+00 : f32
    %45 = vector.broadcast %cst_23 : f32 to vector<16x640xf32>
    %46 = arith.subf %45, %42 : vector<16x640xf32>
    %47 = arith.select %38, %44, %46 : vector<16x640xi1>, vector<16x640xf32>
    %cst_24 = arith.constant -1.250000e-01 : f32
    %cst_25 = arith.constant -3.750000e-01 : f32
    %48 = vector.broadcast %cst_24 : f32 to vector<16x640xf32>
    %49 = vector.broadcast %cst_25 : f32 to vector<16x640xf32>
    %50 = arith.select %38, %48, %49 : vector<16x640xi1>, vector<16x640xf32>
    %c0_26 = arith.constant 0 : index
    %c0_27 = arith.constant 0 : index
    %51 = vector.load %arg13[%c0_26, %c0_27] : memref<16x640xf32, #tpu.memory_space<vmem>>, vector<16x640xf32>
    %cst_28 = arith.constant 0.000000e+00 : f32
    %52 = vector.broadcast %cst_28 : f32 to vector<16x640xf32>
    %53 = arith.minimumf %47, %52 : vector<16x640xf32>
    %54 = math.absf %47 : vector<16x640xf32>
    %cst_29 = arith.constant 0.000000e+00 : f32
    %55 = vector.broadcast %cst_29 : f32 to vector<16x640xf32>
    %56 = arith.subf %55, %54 : vector<16x640xf32>
    %57 = math.exp %56 : vector<16x640xf32>
    %cst_30 = arith.constant 1.000000e+00 : f32
    %58 = vector.broadcast %cst_30 : f32 to vector<16x640xf32>
    %59 = arith.addf %58, %57 : vector<16x640xf32>
    %60 = math.log %59 : vector<16x640xf32>
    %61 = arith.subf %53, %60 : vector<16x640xf32>
    %62 = arith.mulf %50, %61 : vector<16x640xf32>
    %cst_31 = arith.constant 0.000000e+00 : f32
    %63 = vector.broadcast %cst_31 : f32 to vector<16x640xf32>
    %64 = arith.select %40, %62, %63 : vector<16x640xi1>, vector<16x640xf32>
    %65 = arith.addf %51, %64 : vector<16x640xf32>
    %c0_32 = arith.constant 0 : index
    %c0_33 = arith.constant 0 : index
    %66 = vector.load %arg13[%c0_32, %c0_33] : memref<16x640xf32, #tpu.memory_space<vmem>>, vector<16x640xf32>
    tpu.vector_store %arg13[%c0_32, %c0_33], %65 {strides = array<i32>} : memref<16x640xf32, #tpu.memory_space<vmem>>, vector<16x640xf32>,
    %c0_34 = arith.constant 0 : index
    %c0_35 = arith.constant 0 : index
    %67 = vector.load %arg3[%c0_34, %c0_35] : memref<16x128xf32, #tpu.memory_space<vmem>>, vector<16x128xf32>
    %c0_36 = arith.constant 0 : index
    %c0_37 = arith.constant 0 : index
    %68 = vector.load %arg4[%c0_36, %c0_37] : memref<16x128xf32, #tpu.memory_space<vmem>>, vector<16x128xf32>
    %69 = arith.subf %67, %68 : vector<16x128xf32>
    %70 = math.absf %69 : vector<16x128xf32>
    %cst_38 = arith.constant 1.000000e+00 : f32
    %71 = vector.broadcast %cst_38 : f32 to vector<16x128xf32>
    %72 = arith.cmpf olt, %70, %71 : vector<16x128xf32>
    %cst_39 = arith.constant 5.000000e-01 : f32
    %73 = vector.broadcast %cst_39 : f32 to vector<16x128xf32>
    %74 = arith.mulf %73, %69 : vector<16x128xf32>
    %75 = arith.mulf %74, %69 : vector<16x128xf32>
    %cst_40 = arith.constant 5.000000e-01 : f32
    %76 = vector.broadcast %cst_40 : f32 to vector<16x128xf32>
    %77 = arith.subf %70, %76 : vector<16x128xf32>
    %78 = arith.select %72, %75, %77 : vector<16x128xi1>, vector<16x128xf32>
    %c0_41 = arith.constant 0 : index
    %c0_42 = arith.constant 0 : index
    %79 = vector.load %arg8[%c0_41, %c0_42] : memref<32x128xf32, #tpu.memory_space<vmem>>, vector<32x128xf32>
    %cst_43 = arith.constant dense<0.000000e+00> : vector<16x128xf32>
    %80 = tpu.matmul %15, %79, %cst_43 {dimension_numbers = #tpu.dot_dimension_numbers<[1], [0], [0], [1], [0, 0, 1, 1], [], []>} : vector<16x32xf32>, vector<32x128xf32>, vector<16x128xf32> -> vector<16x128xf32>
    %cst_44 = arith.constant 5.000000e-01 : f32
    %81 = vector.broadcast %cst_44 : f32 to vector<16x128xf32>
    %82 = arith.cmpf ogt, %80, %81 : vector<16x128xf32>
    %c0_45 = arith.constant 0 : index
    %c0_46 = arith.constant 0 : index
    %83 = vector.load %arg14[%c0_45, %c0_46] : memref<16x128xf32, #tpu.memory_space<vmem>>, vector<16x128xf32>
    %cst_47 = arith.constant 0.000000e+00 : f32
    %84 = vector.broadcast %cst_47 : f32 to vector<16x128xf32>
    %85 = arith.select %82, %78, %84 : vector<16x128xi1>, vector<16x128xf32>
    %86 = arith.addf %83, %85 : vector<16x128xf32>
    %c0_48 = arith.constant 0 : index
    %c0_49 = arith.constant 0 : index
    %87 = vector.load %arg14[%c0_48, %c0_49] : memref<16x128xf32, #tpu.memory_space<vmem>>, vector<16x128xf32>
    tpu.vector_store %arg14[%c0_48, %c0_49], %86 {strides = array<i32>} : memref<16x128xf32, #tpu.memory_space<vmem>>, vector<16x128xf32>,
    %c4_i32 = arith.constant 4 : i32
    %88 = arith.cmpi eq, %arg1, %c4_i32 : i32
    %89 = arith.extui %88 : i1 to i32
    %c0_i32_50 = arith.constant 0 : i32
    %90 = arith.cmpi ne, %89, %c0_i32_50 : i32
    scf.if %90 {
      %91 = tpu.iota {dimensions = array<i32: 0>} : vector<8x128xi32>
      %92 = tpu.iota {dimensions = array<i32: 1>} : vector<8x128xi32>
      %c0_i32_51 = arith.constant 0 : i32
      %93 = vector.broadcast %c0_i32_51 : i32 to vector<8x128xi32>
      %94 = arith.cmpi eq, %91, %93 : vector<8x128xi32>
      %c0_i32_52 = arith.constant 0 : i32
      %95 = vector.broadcast %c0_i32_52 : i32 to vector<8x128xi32>
      %96 = arith.cmpi eq, %92, %95 : vector<8x128xi32>
      %97 = arith.andi %94, %96 : vector<8x128xi1>
      %c0_53 = arith.constant 0 : index
      %c0_54 = arith.constant 0 : index
      %98 = vector.load %arg13[%c0_53, %c0_54] : memref<16x640xf32, #tpu.memory_space<vmem>>, vector<16x640xf32>
      %99 = vector.shape_cast %98 : vector<16x640xf32> to vector<1x16x640xf32>
      %cst_55 = arith.constant dense<0.000000e+00> : vector<1xf32>
      %100 = vector.multi_reduction <add>, %99, %cst_55 [1, 2] : vector<1x16x640xf32> to vector<1xf32>
      %101 = vector.shape_cast %100 : vector<1xf32> to vector<1x1x1xf32>
      %102 = vector.extract %101[0, 0, 0] : f32 from vector<1x1x1xf32>
      %cst_56 = arith.constant 0.000000e+00 : f32
      %103 = vector.broadcast %102 : f32 to vector<8x128xf32>
      %104 = vector.broadcast %cst_56 : f32 to vector<8x128xf32>
      %105 = arith.select %97, %103, %104 : vector<8x128xi1>, vector<8x128xf32>
      %c0_57 = arith.constant 0 : index
      %c0_58 = arith.constant 0 : index
      %106 = vector.load %arg9[%c0_57, %c0_58] : memref<8x128xf32, #tpu.memory_space<vmem>>, vector<8x128xf32>
      tpu.vector_store %arg9[%c0_57, %c0_58], %105 {strides = array<i32>} : memref<8x128xf32, #tpu.memory_space<vmem>>, vector<8x128xf32>,
      %c0_59 = arith.constant 0 : index
      %c0_60 = arith.constant 0 : index
      %107 = vector.load %arg14[%c0_59, %c0_60] : memref<16x128xf32, #tpu.memory_space<vmem>>, vector<16x128xf32>
      %108 = vector.shape_cast %107 : vector<16x128xf32> to vector<1x16x128xf32>
      %cst_61 = arith.constant dense<0.000000e+00> : vector<1xf32>
      %109 = vector.multi_reduction <add>, %108, %cst_61 [1, 2] : vector<1x16x128xf32> to vector<1xf32>
      %110 = vector.shape_cast %109 : vector<1xf32> to vector<1x1x1xf32>
      %111 = vector.extract %110[0, 0, 0] : f32 from vector<1x1x1xf32>
      %cst_62 = arith.constant 0.000000e+00 : f32
      %112 = vector.broadcast %111 : f32 to vector<8x128xf32>
      %113 = vector.broadcast %cst_62 : f32 to vector<8x128xf32>
      %114 = arith.select %97, %112, %113 : vector<8x128xi1>, vector<8x128xf32>
      %c0_63 = arith.constant 0 : index
      %c0_64 = arith.constant 0 : index
      %115 = vector.load %arg10[%c0_63, %c0_64] : memref<8x128xf32, #tpu.memory_space<vmem>>, vector<8x128xf32>
      tpu.vector_store %arg10[%c0_63, %c0_64], %114 {strides = array<i32>} : memref<8x128xf32, #tpu.memory_space<vmem>>, vector<8x128xf32>,
      %c0_65 = arith.constant 0 : index
      %c0_66 = arith.constant 0 : index
      %116 = vector.load %arg15[%c0_65, %c0_66] : memref<16x32xf32, #tpu.memory_space<vmem>>, vector<16x32xf32>
      %117 = vector.shape_cast %116 : vector<16x32xf32> to vector<1x16x32xf32>
      %cst_67 = arith.constant dense<0.000000e+00> : vector<1xf32>
      %118 = vector.multi_reduction <add>, %117, %cst_67 [1, 2] : vector<1x16x32xf32> to vector<1xf32>
      %119 = vector.shape_cast %118 : vector<1xf32> to vector<1x1x1xf32>
      %120 = vector.extract %119[0, 0, 0] : f32 from vector<1x1x1xf32>
      %cst_68 = arith.constant 0.000000e+00 : f32
      %121 = vector.broadcast %120 : f32 to vector<8x128xf32>
      %122 = vector.broadcast %cst_68 : f32 to vector<8x128xf32>
      %123 = arith.select %97, %121, %122 : vector<8x128xi1>, vector<8x128xf32>
      %c0_69 = arith.constant 0 : index
      %c0_70 = arith.constant 0 : index
      %124 = vector.load %arg11[%c0_69, %c0_70] : memref<8x128xf32, #tpu.memory_space<vmem>>, vector<8x128xf32>
      tpu.vector_store %arg11[%c0_69, %c0_70], %123 {strides = array<i32>} : memref<8x128xf32, #tpu.memory_space<vmem>>, vector<8x128xf32>,
      %c0_71 = arith.constant 0 : index
      %c0_72 = arith.constant 0 : index
      %125 = vector.load %arg16[%c0_71, %c0_72] : memref<16x32xf32, #tpu.memory_space<vmem>>, vector<16x32xf32>
      %126 = vector.shape_cast %125 : vector<16x32xf32> to vector<1x16x32xf32>
      %cst_73 = arith.constant dense<0.000000e+00> : vector<1xf32>
      %127 = vector.multi_reduction <add>, %126, %cst_73 [1, 2] : vector<1x16x32xf32> to vector<1xf32>
      %128 = vector.shape_cast %127 : vector<1xf32> to vector<1x1x1xf32>
      %129 = vector.extract %128[0, 0, 0] : f32 from vector<1x1x1xf32>
      %cst_74 = arith.constant 0.000000e+00 : f32
      %130 = vector.broadcast %129 : f32 to vector<8x128xf32>
      %131 = vector.broadcast %cst_74 : f32 to vector<8x128xf32>
      %132 = arith.select %97, %130, %131 : vector<8x128xi1>, vector<8x128xf32>
      %c0_75 = arith.constant 0 : index
      %c0_76 = arith.constant 0 : index
      %133 = vector.load %arg12[%c0_75, %c0_76] : memref<8x128xf32, #tpu.memory_space<vmem>>, vector<8x128xf32>
      tpu.vector_store %arg12[%c0_75, %c0_76], %132 {strides = array<i32>} : memref<8x128xf32, #tpu.memory_space<vmem>>, vector<8x128xf32>,
    } else {
    }
    return
  }
  func.func @transform_0(%arg0: i32, %arg1: i32) -> (i32, i32) {
    %c5_i32 = arith.constant 5 : i32
    %0 = arith.muli %arg0, %c5_i32 : i32
    %1 = arith.addi %0, %arg1 : i32
    %c4_i32 = arith.constant 4 : i32
    %2 = arith.minsi %1, %c4_i32 : i32
    %c0_i32 = arith.constant 0 : i32
    %c0_i32_0 = arith.constant 0 : i32
    return %2, %c0_i32 : i32, i32
  }
  func.func @transform_1(%arg0: i32, %arg1: i32) -> (i32, i32) {
    %c5_i32 = arith.constant 5 : i32
    %0 = arith.muli %arg0, %c5_i32 : i32
    %1 = arith.addi %0, %arg1 : i32
    %c4_i32 = arith.constant 4 : i32
    %2 = arith.minsi %1, %c4_i32 : i32
    %c0_i32 = arith.constant 0 : i32
    %c0_i32_0 = arith.constant 0 : i32
    return %2, %c0_i32 : i32, i32
  }
  func.func @transform_2(%arg0: i32, %arg1: i32) -> (i32, i32) {
    %c5_i32 = arith.constant 5 : i32
    %0 = arith.muli %arg0, %c5_i32 : i32
    %1 = arith.addi %0, %arg1 : i32
    %c4_i32 = arith.constant 4 : i32
    %2 = arith.minsi %1, %c4_i32 : i32
    %c0_i32 = arith.constant 0 : i32
    %c0_i32_0 = arith.constant 0 : i32
    return %2, %c0_i32 : i32, i32
  }
  func.func @transform_3(%arg0: i32, %arg1: i32) -> (i32, i32) {
    %c5_i32 = arith.constant 5 : i32
    %0 = arith.muli %arg0, %c5_i32 : i32
    %1 = arith.addi %0, %arg1 : i32
    %c4_i32 = arith.constant 4 : i32
    %2 = arith.minsi %1, %c4_i32 : i32
    %c0_i32 = arith.constant 0 : i32
    %c0_i32_0 = arith.constant 0 : i32
    return %2, %c0_i32 : i32, i32
  }
  func.func @transform_4(%arg0: i32, %arg1: i32) -> (i32, i32) {
    %c0_i32 = arith.constant 0 : i32
    %c0_i32_0 = arith.constant 0 : i32
    %c0_i32_1 = arith.constant 0 : i32
    return %c0_i32, %c0_i32_0 : i32, i32
  }
  func.func @transform_5(%arg0: i32, %arg1: i32) -> (i32, i32) {
    %c0_i32 = arith.constant 0 : i32
    %c0_i32_0 = arith.constant 0 : i32
    %c0_i32_1 = arith.constant 0 : i32
    return %c0_i32, %c0_i32_0 : i32, i32
  }
  func.func @transform_6(%arg0: i32, %arg1: i32) -> (i32, i32) {
    %c0_i32 = arith.constant 0 : i32
    %c0_i32_0 = arith.constant 0 : i32
    %c0_i32_1 = arith.constant 0 : i32
    return %c0_i32, %c0_i32_0 : i32, i32
  }
  func.func @transform_7(%arg0: i32, %arg1: i32) -> (i32, i32) {
    %c0_i32 = arith.constant 0 : i32
    %c0_i32_0 = arith.constant 0 : i32
    return %arg0, %c0_i32 : i32, i32
  }
  func.func @transform_8(%arg0: i32, %arg1: i32) -> (i32, i32) {
    %c0_i32 = arith.constant 0 : i32
    %c0_i32_0 = arith.constant 0 : i32
    return %arg0, %c0_i32 : i32, i32
  }
  func.func @transform_9(%arg0: i32, %arg1: i32) -> (i32, i32) {
    %c0_i32 = arith.constant 0 : i32
    %c0_i32_0 = arith.constant 0 : i32
    return %arg0, %c0_i32 : i32, i32
  }
  func.func @transform_10(%arg0: i32, %arg1: i32) -> (i32, i32) {
    %c0_i32 = arith.constant 0 : i32
    %c0_i32_0 = arith.constant 0 : i32
    return %arg0, %c0_i32 : i32, i32
  }
}

</mosaic_0001>

<bundles_post_ra>
// kernel: focal_loss_forward.1
= control target key start
LH: loop header
LB: loop body
LE: loop exit
PB: predicated region body
PF: predicated region fallthrough
CT: control target
= control target key end

     0   :  { %s1570_s13 = smov 0   ;;  %s1572_s14 = smov 0   ;;  %s2013_s0 = inlined_call_operand.vmem [shape: f32[77,640], index: 0, kind: input, shape index: {}]   ;;  %s2014_s1 = inlined_call_operand.vmem [shape: f32[77,128], index: 1, kind: input, shape index: {}]   ;;  %s2015_s2 = inlined_call_operand.vmem [shape: f32[77,128], index: 2, kind: input, shape index: {}]   ;;  %s2016_s3 = inlined_call_operand.vmem [shape: f32[77,32], index: 3, kind: input, shape index: {}]   ;;  %s2017_s4 = inlined_call_operand.vmem [shape: f32[32,640], index: 4, kind: input, shape index: {}]   ;;  %s2018_s5 = inlined_call_operand.vmem [shape: f32[1,640], index: 5, kind: input, shape index: {}]   ;;  %s2019_s6 = inlined_call_operand.vmem [shape: f32[32,128], index: 6, kind: input, shape index: {}]   ;;  %s2020_s7 = inlined_call_operand.vmem [shape: f32[8,128], index: 7, kind: output, shape index: {0}]   ;;  %s2021_s8 = inlined_call_operand.vmem [shape: f32[8,128], index: 8, kind: output, shape index: {1}]   ;;  %s2022_s9 = inlined_call_operand.vmem [shape: f32[8,128], index: 9, kind: output, shape index: {2}]   ;;  %s2023_s10 = inlined_call_operand.vmem [shape: f32[8,128], index: 10, kind: output, shape index: {3}]  }
   0x1   :  { %s1574_s15 = smov 0  }
   0x2 LB: > { %s30_s16 = sadd.s32 1, %s1506_s14  ;;  %p1368_p0 = scmp.ge.s32.totalorder %s1510_s15, 1  ;;  %s1510_s15 = sphi %s1574_s15, %s21_s15   ;;  %s1506_s14 = sphi %s1572_s14, %s2049_s14   ;;  %s1502_s13 = sphi %s1570_s13, %s2048_s13  }
   0x3   : > { %p31_p1 = scmp.ge.s32.totalorder %s30_s16, 5  ;;  %p430_p2 = scmp.lt.s32.totalorder %s1510_s15, 6 }
   0x5   : > { %s2051_s16 = smov (%p31_p1, %s30_s16), 0  ;;  %p431_p3 = pnand %p1368_p0, %p430_p2 }
   0x6   : > { %p513_p4 = scmp.lt.s32.totalorder (!%p431_p3), %s1502_s13, 4  ;;  %p1377_p6 = scmp.ne.s32.totalorder (!%p431_p3), %s1502_s13, 0 }
   0x7   : > { %434 = sbr.rel (%p431_p3) target bundleno = 453 (0x1c5), region = 48 }
   0xc   : > { %s514_s17 = scalar_select %p513_p4, %s1502_s13, 4 }
   0xe   : > { %s1369_s18 = sshll.u32 %s514_s17, 1 }
   0xf   : > { %p516_p5 = scmp.lt.s32.totalorder %s1369_s18, 9 }
  0x10   : > { %587 = sbr.rel (%p1377_p6) target bundleno = 38 (0x26), region = 52 }
  0x11   : > { %s2053_s18 = smov (!%p516_p5, %s1369_s18), 9 }
  0x12   : > { %s1412_s19 = smul.u32 40, %s2053_s18  ;;  %s1372_s20 = sshll.u32 %s2053_s18, 3 }
  0x13   : > { %s1595_s23 = scalar_lea.vmem %s2014_s1, %s1372_s20  ;;  %s1600_s26 = scalar_lea.vmem %s2015_s2, %s1372_s20 }
  0x14   : > { %s1605_s29 = scalar_lea.vmem %s2013_s0, %s1412_s19  ;;  %s1610_s12 = scalar_lea.vmem %s2016_s3, %s1372_s20 }
  0x15   : > { %v1512_v0 = vmov 0.0   ;;  %vm600_vm0 = vcmask 261120  }
  0x16   : > { %588 = vst [vmem:[#allocation2 + $0x30] sm:$0xff] %v1512_v0 }
  0x17   : > { %589 = vst [vmem:[#allocation2] sm:$0xff] %v1512_v0 }
  0x18   : > { %590 = vst [vmem:[#allocation2 + $0x18] sm:$0xff] %v1512_v0 }
  0x19   : > { %591 = vst [vmem:[#allocation2 + $0x10] sm:$0xff] %v1512_v0 }
  0x1a   : > { %592 = vst [vmem:[#allocation2 + $0x48] sm:$0xff] %v1512_v0 }
  0x1b   : > { %593 = vst [vmem:[#allocation2 + $0x28] sm:$0xff] %v1512_v0 }
  0x1c   : > { %594 = vst [vmem:[#allocation2 + $0x8] sm:$0xff] %v1512_v0 }
  0x1d   : > { %595 = vst [vmem:[#allocation2 + $0x20] sm:$0xff] %v1512_v0 }
  0x1e   : > { %596 = vst [vmem:[#allocation2 + $0x40] sm:$0xff] %v1512_v0 }
  0x1f   : > { %597 = vst [vmem:[#allocation2 + $0x38] sm:$0xff] %v1512_v0 }
  0x20   : > { %598 = vst [vmem:[#allocation3 + $0x8] sm:$0xff] %v1512_v0 }
  0x21   : > { %599 = vst [vmem:[#allocation3] sm:$0xff] %v1512_v0 }
  0x22   : > { %601 = vst.msk [vmem:[#allocation4] sm:$0xff] %vm600_vm0, %v1512_v0 }
  0x23   : > { %602 = vst.msk [vmem:[#allocation4 + $0x8] sm:$0xff] %vm600_vm0, %v1512_v0 }
  0x24   : > { %603 = vst.msk [vmem:[#allocation5] sm:$0xff] %vm600_vm0, %v1512_v0 }
  0x25   : > { %604 = vst.msk [vmem:[#allocation5 + $0x8] sm:$0xff] %vm600_vm0, %v1512_v0 }
  0x26 PF: > { %v674_v1 = vld [vmem:[%s2017_s4 + $0x78] sm:$0xff]  ;;  %v675_v2 = vld [vmem:[%s2017_s4 + $0x80] sm:$0xff]  ;;  %v669_v3 = vld [vmem:[%s2017_s4 + $0x50] sm:$0xff]  ;;  %s1378_s24 = sshll.u32 %s1502_s13, 4  ;;  %v608_v4 = vlaneseq  ;;  %vm634_vm1 = vcmask 261120   ;;  %v1513_v23 = vmov 0.0  }
  0x27   : > { %697 = vmatpush.msra.mxu0 %v674_v1  ;;  %720 = vmatpush.msra.mxu1 %v675_v2  ;;  %v670_v5 = vld [vmem:[%s2017_s4 + $0x58] sm:$0xff]  ;;  %v611_v6 = vstv %s1378_s24  ;;  %v664_v7 = vld [vmem:[%s2017_s4 + $0x28] sm:$0xff]  ;;  %v665_v8 = vld [vmem:[%s2017_s4 + $0x30] sm:$0xff]  ;;  %p1397_p7 = scmp.ne.s32.totalorder %s1502_s13, 4 }
  0x28   : > { %1404 = vmatpush.msra.mxu2 %v674_v1  ;;  %1408 = vmatpush.msra.mxu3 %v675_v2  ;;  %v1633_v9 = vshrl.u32 %v608_v4, 7  ;;  %v659_v10 = vld [vmem:[%s2017_s4] sm:$0xff]  ;;  %v660_v11 = vld [vmem:[%s2017_s4 + $0x8] sm:$0xff]  ;;  %v678_v20 = vld [vmem:[%s2017_s4 + $0x98] sm:$0xff] }
  0x29   : > { %698 = vmatpush.msra.mxu0 %v669_v3  ;;  %721 = vmatpush.msra.mxu1 %v670_v5  ;;  %v616_v13 = vld [vmem:[%s1610_s12] sm:$0xff]  ;;  %v617_v16 = vld [vmem:[%s1610_s12 + $0x8] sm:$0xff]  ;;  %v677_v28 = vld [vmem:[%s2017_s4 + $0x90] sm:$0xff] }
  0x2a   : > { %1405 = vmatpush.msra.mxu2 %v669_v3  ;;  %1409 = vmatpush.msra.mxu3 %v670_v5  ;;  %v612_v12 = vadd.s32 %v611_v6, %v1633_v9  ;;  %v610_v14 = vadd.s32 8, %v1633_v9  ;;  %v637_v19 = vld [vmem:[#allocation4] sm:$0xff]  ;;  %v676_v22 = vld [vmem:[%s2017_s4 + $0x88] sm:$0xff]  ;;  %v673_v29 = vld [vmem:[%s2017_s4 + $0x70] sm:$0xff] }
  0x2b   : > { %699 = vmatpush.msra.mxu0 %v664_v7  ;;  %722 = vmatpush.msra.mxu1 %v665_v8  ;;  %v624_v18 = vld [vmem:[#allocation5] sm:$0xff]  ;;  %v638_v27 = vld [vmem:[#allocation4 + $0x8] sm:$0xff]  ;;  %v671_v32 = vld [vmem:[%s2017_s4 + $0x60] sm:$0xff] }
  0x2c   : > { %1406 = vmatpush.msra.mxu2 %v664_v7  ;;  %1410 = vmatpush.msra.mxu3 %v665_v8  ;;  %vm614_vm2 = vcmp.lt.s32.totalorder %v612_v12, 77  ;;  %v613_v15 = vadd.s32 %v611_v6, %v610_v14  ;;  %v625_v21 = vld [vmem:[#allocation5 + $0x8] sm:$0xff]  ;;  %v672_v36 = vld [vmem:[%s2017_s4 + $0x68] sm:$0xff]  ;;  %v1062_v41 = vld [vmem:[%s2019_s6 + $0x10] sm:$0xff] }
  0x2d   : > { %700 = vmatpush.msra.mxu0 %v659_v10  ;;  %723 = vmatpush.msra.mxu1 %v660_v11  ;;  %v1645_v17 = vsel %vm614_vm2, %v616_v13, -1.0  ;;  %v1063_v33 = vld [vmem:[%s2019_s6 + $0x18] sm:$0xff]  ;;  %v668_v37 = vld [vmem:[%s2017_s4 + $0x48] sm:$0xff]  ;;  %v667_v42 = vld [vmem:[%s2017_s4 + $0x40] sm:$0xff] }
  0x2e   : > { %vm626_vm3 = vcmp.gt.f32.partialorder %v1645_v17, 0.5  ;;  %vm639_vm4 = vcmp.gt.f32.partialorder %v1645_v17, -0.5  ;;  %1383 = vmatmul.msk.f32.vlgmr.msra.gmra.mxu0 %vm634_vm1, %v1645_v17  ;;  %1385 = vmatmul.msk.f32.vlgmr.msra.gmra.mxu1 %vm634_vm1, %v1645_v17  ;;  %vm615_vm5 = vcmp.lt.s32.totalorder %v613_v15, 77  ;;  %v666_v40 = vld [vmem:[%s2017_s4 + $0x38] sm:$0xff]  ;;  %v663_v43 = vld [vmem:[%s2017_s4 + $0x20] sm:$0xff]  ;;  %v661_v44 = vld [vmem:[%s2017_s4 + $0x10] sm:$0xff] }
  0x2f   : > { %v1379_v24 = vsel %vm626_vm3, 1.0, %v1513_v23  ;;  %v1381_v25 = vsel %vm639_vm4, 1.0, %v1513_v23  ;;  %1407 = vmatpush.msra.mxu2 %v659_v10  ;;  %1411 = vmatpush.msra.mxu3 %v660_v11  ;;  %v623_v26 = vsel %vm615_vm5, %v617_v16, -1.0  ;;  %v662_v45 = vld [vmem:[%s2017_s4 + $0x18] sm:$0xff]  ;;  %v1061_v46 = vld [vmem:[%s2019_s6 + $0x8] sm:$0xff]  ;;  %v1060_v47 = vld [vmem:[%s2019_s6] sm:$0xff] }
  0x30   : > { %v632_v30 = vadd.f32 %v1379_v24, %v624_v18  ;;  %v645_v31 = vadd.f32 %v1381_v25, %v637_v19  ;;  %789 = vmatpush.msrb.mxu0 %v678_v20  ;;  %vm627_vm6 = vcmp.gt.f32.partialorder %v623_v26, 0.5  ;;  %vm640_vm7 = vcmp.gt.f32.partialorder %v623_v26, -0.5  ;;  %1384 = vmatmul.msk.f32.vlgmr.msra.gmra.mxu2 %vm634_vm1, %v623_v26  ;;  %v649_v48 = vld [vmem:[%s1605_s29] sm:$0xff]  ;;  %v650_v50 = vld [vmem:[%s1605_s29 + $0x8] sm:$0xff]  ;;  %v655_v58 = vld [vmem:[%s1605_s29 + $0x30] sm:$0xff] }
  0x31   : > { %v1380_v34 = vsel %vm627_vm6, 1.0, %v1513_v23  ;;  %v1382_v35 = vsel %vm640_vm7, 1.0, %v1513_v23  ;;  %1386 = vmatmul.msk.f32.vlgmr.msra.gmra.mxu3 %vm634_vm1, %v623_v26  ;;  %743 = vmatpush.msrb.mxu2 %v676_v22  ;;  %v1723_v49 = vld [vmem:[%s2018_s5] sm:$0x1f]  ;;  %v852_v52 = vmul.f32 2.0, %v649_v48  ;;  %v853_v54 = vmul.f32 2.0, %v650_v50 }
  0x32   : > { %635 = vst.msk [vmem:[#allocation5] sm:$0xff] %vm634_vm1, %v632_v30  ;;  %v633_v38 = vadd.f32 %v1380_v34, %v625_v21  ;;  %v646_v39 = vadd.f32 %v1382_v35, %v638_v27  ;;  %766 = vmatpush.msrb.mxu3 %v677_v28  ;;  %790 = vmatpush.msrb.mxu0 %v673_v29  ;;  %v802_v51 = vperm.slane %v1723_v49, 0  ;;  %v803_v53 = vperm.slane %v1723_v49, 1  ;;  %v654_v55 = vld [vmem:[%s1605_s29 + $0x28] sm:$0xff]  ;;  %v653_v62 = vld [vmem:[%s1605_s29 + $0x20] sm:$0xff]  ;;  %v651_v16 = vld [vmem:[%s1605_s29 + $0x10] sm:$0xff] }
  0x33   : > { %647 = vst.msk [vmem:[#allocation4] sm:$0xff] %vm634_vm1, %v645_v31  ;;  %744 = vmatpush.msrb.mxu2 %v671_v32  ;;  %1076 = vmatpush.msrb.mxu1 %v1063_v33  ;;  %v862_v60 = vadd.f32 1.0, %v852_v52  ;;  %v872_v63 = vsub.f32 1.0, %v852_v52  ;;  %v863_v0 = vadd.f32 1.0, %v853_v54  ;;  %v873_v1 = vsub.f32 1.0, %v853_v54  ;;  %v652_v20 = vld [vmem:[%s1605_s29 + $0x18] sm:$0xff] }
  0x34   : > { %636 = vst.msk [vmem:[#allocation5 + $0x8] sm:$0xff] %vm634_vm1, %v633_v38  ;;  %767 = vmatpush.msrb.mxu3 %v672_v36  ;;  %791 = vmatpush.msrb.mxu0 %v668_v37  ;;  %v857_v2 = vmul.f32 2.0, %v654_v55  ;;  %v858_v6 = vmul.f32 2.0, %v655_v58  ;;  %v856_v7 = vmul.f32 2.0, %v653_v62  ;;  %v806_v11 = vperm.slane %v1723_v49, 4  ;;  %v658_v32 = vld [vmem:[%s1605_s29 + $0x48] sm:$0xff] }
  0x35   : > { %648 = vst.msk [vmem:[#allocation4 + $0x8] sm:$0xff] %vm634_vm1, %v646_v39  ;;  %745 = vmatpush.msrb.mxu2 %v666_v40  ;;  %1077 = vmatpush.msrb.mxu1 %v1062_v41  ;;  %v804_v25 = vperm.slane %v1723_v49, 2  ;;  %v854_v31 = vmul.f32 2.0, %v651_v16  ;;  %v805_v35 = vperm.slane %v1723_v49, 3  ;;  %v1772_v36 = vmul.f32 2.0, %v652_v20  ;;  %v656_v37 = vld [vmem:[%s1605_s29 + $0x38] sm:$0xff] }
  0x36   : > { %768 = vmatpush.msrb.mxu3 %v667_v42  ;;  %792 = vmatpush.msrb.mxu0 %v663_v43  ;;  %v867_v14 = vadd.f32 1.0, %v857_v2  ;;  %v877_v15 = vsub.f32 1.0, %v857_v2  ;;  %v868_v19 = vadd.f32 1.0, %v858_v6  ;;  %v878_v22 = vsub.f32 1.0, %v858_v6 }
  0x37   : > { %746 = vmatpush.msrb.mxu2 %v661_v44  ;;  %1391 = vmatmul.msk.f32.vlgmr.msrb.gmra.mxu0 %vm634_vm1, %v1645_v17  ;;  %v866_v23 = vadd.f32 1.0, %v856_v7  ;;  %v876_v24 = vsub.f32 1.0, %v856_v7  ;;  %v1775_v43 = vmul.f32 2.0, %v658_v32  ;;  %v657_v44 = vld [vmem:[%s1605_s29 + $0x40] sm:$0xff]  ;;  %v865_v54 = vadd.f32 1.0, %v1772_v36 }
  0x38   : > { %769 = vmatpush.msrb.mxu3 %v662_v45  ;;  %1387 = vmatmul.msk.f32.vlgmr.msrb.gmra.mxu2 %vm634_vm1, %v1645_v17  ;;  %v1798_v55 = vmul.f32 2.0, %v657_v44 }
  0x39   : > { %1389 = vmatmul.msk.f32.vlgmr.msrb.gmra.mxu3 %vm634_vm1, %v1645_v17  ;;  %1078 = vmatpush.msrb.mxu1 %v1061_v46  ;;  %v864_v46 = vadd.f32 1.0, %v854_v31  ;;  %v871_v62 = vadd.f32 1.0, %v1775_v43 }
  0x3a   : > { %v1830_v20 = vadd.f32 1.0, %v1798_v55 }
  0x3b   : > { %1079 = vmatpush.msrb.mxu1 %v1060_v47  ;;  %v874_v47 = vsub.f32 1.0, %v854_v31 }
  0x3c   : > { %1395 = vmatmul.msk.f32.vlgmr.msrb.gmra.mxu1 %vm634_vm1, %v1645_v17 }
  0x3f   : > { %1392 = vmatmul.msk.f32.gmra.mxu0 %vm634_vm1, %v623_v26 }
  0x40   : > { %1388 = vmatmul.msk.f32.gmra.mxu2 %vm634_vm1, %v623_v26 }
  0x41   : > { %1390 = vmatmul.msk.f32.gmra.mxu3 %vm634_vm1, %v623_v26 }
  0x44   : > { %1396 = vmatmul.msk.f32.gmra.mxu1 %vm634_vm1, %v623_v26 }
  0xab   : > { %v1729_v56 = vpop.f32.mrf.mxu0  ;;  %v1731_v57 = vpop.f32.mrf.mxu1 }
  0xac   : > { %v812_v59 = vsub.f32 %v1729_v56, %v802_v51  ;;  %v813_v61 = vsub.f32 %v1731_v57, %v803_v53  ;;  %vm842_vm15 = vcmp.gt.f32.partialorder %v1729_v56, -0.5  ;;  %vm843_vm2 = vcmp.gt.f32.partialorder %v1731_v57, -0.5 }
  0xae   : > { %v822_v3 = vand.u32 2147483647, %v812_v59  ;;  %v823_v5 = vand.u32 2147483647, %v813_v61  ;;  %v875_v61 = vsub.f32 1.0, %v1772_v36  ;;  %v880_v36 = vsub.f32 1.0, %v1798_v55 }
  0xb0   : > { %vm1737_vm8 = vcmp.lt.f32.partialorder %v822_v3, 0.5  ;;  %vm1741_vm9 = vcmp.lt.f32.partialorder %v823_v5, 0.5  ;;  %v881_v5 = vsub.f32 1.0, %v1775_v43 }
  0xb1   : > { %v1748_v12 = vsel %vm1737_vm8, %v862_v60, %v872_v63  ;;  %v1752_v13 = vsel %vm1741_vm9, %v863_v0, %v873_v1 }
  0xb2   : > { %v922_v17 = vand.u32 2147483647, %v1748_v12  ;;  %v923_v18 = vand.u32 2147483647, %v1752_v13  ;;  %v912_v8 = vmin.f32 %v1748_v12, 0.0 }
  0xb3   : > { %v1758_v21 = vpop.f32.mrf.mxu2 }
  0xb4   : > { %v932_v26 = vsub.f32 0.0, %v922_v17  ;;  %v933_v27 = vsub.f32 0.0, %v923_v18  ;;  %v817_v28 = vsub.f32 %v1758_v21, %v802_v51  ;;  %v1762_v29 = vpop.f32.mrf.mxu3  ;;  %v1764_v30 = vpop.f32.mrf.mxu0  ;;  %v1790_v51 = vmul.f32 2.0, %v656_v37 }
  0xb5   : > { %v818_v33 = vsub.f32 %v1762_v29, %v803_v53  ;;  %v816_v34 = vsub.f32 %v1764_v30, %v806_v11  ;;  %v1514_v37 = vmov -0.375   ;;  %vm847_vm4 = vcmp.gt.f32.partialorder %v1758_v21, -0.5 }
  0xb6   : > { %v942_v38 = vmul.f32 1.442695, %v932_v26  ;;  %v944_v39 = vmul.f32 1.442695, %v933_v27  ;;  %v827_v40 = vand.u32 2147483647, %v817_v28 }
  0xb7   : > { %v828_v41 = vand.u32 2147483647, %v818_v33  ;;  %v826_v42 = vand.u32 2147483647, %v816_v34  ;;  %vm848_vm6 = vcmp.gt.f32.partialorder %v1762_v29, -0.5  ;;  %vm846_vm7 = vcmp.gt.f32.partialorder %v1764_v30, -0.5 }
  0xb8   : > { %1448 = vpow2.f32 %v942_v38  ;;  %vm1778_vm10 = vcmp.lt.f32.partialorder %v827_v40, 0.5  ;;  %v893_v40 = vsel %vm1741_vm9, -0.125, %v1514_v37  ;;  %v904_v29 = vld [vmem:[#allocation2 + $0x18] sm:$0xff] }
  0xb9   : > { %1450 = vpow2.f32 %v944_v39  ;;  %v1784_v48 = vsel %vm1778_vm10, %v867_v14, %v877_v15  ;;  %vm1786_vm11 = vcmp.lt.f32.partialorder %v828_v41, 0.5  ;;  %vm1801_vm12 = vcmp.lt.f32.partialorder %v826_v42, 0.5  ;;  %v1081_v57 = vpop.f32.mrf.mxu1 }
  0xba   : > { %v927_v52 = vand.u32 2147483647, %v1784_v48  ;;  %v1795_v53 = vsel %vm1786_vm11, %v868_v19, %v878_v22  ;;  %v1811_v0 = vsel %vm1801_vm12, %v866_v23, %v876_v24  ;;  %v1823_v14 = vadd.f32 1.0, %v1790_v51 }
  0xbb   : > { %v928_v58 = vand.u32 2147483647, %v1795_v53  ;;  %v1805_v60 = vpop.f32.mrf.mxu2  ;;  %v926_v7 = vand.u32 2147483647, %v1811_v0  ;;  %v879_v15 = vsub.f32 1.0, %v1790_v51  ;;  %v1868_v10 = vsel %vm1778_vm10, -0.125, %v1514_v37 }
  0xbc   : > { %v937_v63 = vsub.f32 0.0, %v927_v52  ;;  %v814_v1 = vsub.f32 %v1805_v60, %v804_v25  ;;  %v1816_v2 = vpop.f32.mrf.mxu3  ;;  %v1818_v3 = vpop.f32.mrf.mxu0  ;;  %v909_v52 = vld [vmem:[#allocation2 + $0x20] sm:$0xff] }
  0xbd   : > { %v938_v6 = vsub.f32 0.0, %v928_v58  ;;  %v815_v19 = vsub.f32 %v1816_v2, %v805_v35  ;;  %v936_v26 = vsub.f32 0.0, %v926_v7  ;;  %v821_v27 = vsub.f32 %v1818_v3, %v806_v11 }
  0xbe   : > { %v1449_v16 = vpop.eup %1448  ;;  %v952_v17 = vmul.f32 1.442695, %v937_v63  ;;  %v824_v18 = vand.u32 2147483647, %v814_v1  ;;  %v892_v11 = vsel %vm1737_vm8, -0.125, %v1514_v37  ;;  %v1888_v7 = vsel %vm1786_vm11, -0.125, %v1514_v37 }
  0xbf   : > { %v1451_v22 = vpop.eup %1450  ;;  %v962_v23 = vadd.f32 1.0, %v1449_v16  ;;  %v954_v24 = vmul.f32 1.442695, %v938_v6  ;;  %v825_v32 = vand.u32 2147483647, %v815_v19  ;;  %vm1087_vm8 = vcmp.gt.f32.partialorder %v1081_v57, 0.5 }
  0xc0   : > { %v963_v28 = vadd.f32 1.0, %v1451_v22  ;;  %1452 = vpow2.f32 %v952_v17  ;;  %vm1835_vm13 = vcmp.lt.f32.partialorder %v824_v18, 0.5  ;;  %v950_v33 = vmul.f32 1.442695, %v936_v26 }
  0xc1   : > { %1454 = vlog2.f32 %v962_v23  ;;  %v1841_v34 = vsel %vm1835_vm13, %v864_v46, %v874_v47  ;;  %vm1848_vm14 = vcmp.lt.f32.partialorder %v825_v32, 0.5  ;;  %v831_v42 = vand.u32 2147483647, %v821_v27 }
  0xc2   : > { %1456 = vlog2.f32 %v963_v28  ;;  %v924_v38 = vand.u32 2147483647, %v1841_v34  ;;  %v1857_v41 = vsel %vm1848_vm14, %v865_v54, %v875_v61  ;;  %v913_v47 = vmin.f32 %v1752_v13, 0.0 }
  0xc3   : > { %1458 = vpow2.f32 %v954_v24  ;;  %v1859_v43 = vpop.f32.mrf.mxu2  ;;  %v925_v46 = vand.u32 2147483647, %v1857_v41  ;;  %vm1870_vm0 = vcmp.lt.f32.partialorder %v831_v42, 0.5  ;;  %v917_v13 = vmin.f32 %v1784_v48, 0.0  ;;  %v1044_v42 = vld [vmem:[%s1600_s26] sm:$0xff] }
  0xc4   : > { %1460 = vpow2.f32 %v950_v33  ;;  %v934_v44 = vsub.f32 0.0, %v924_v38  ;;  %v819_v12 = vsub.f32 %v1859_v43, %v804_v25  ;;  %v1877_v54 = vpop.f32.mrf.mxu3  ;;  %v1883_v45 = vsel %vm1870_vm0, %v871_v62, %v881_v5  ;;  %v1042_v38 = vld [vmem:[%s1595_s23] sm:$0xff] }
  0xc5   : > { %v935_v63 = vsub.f32 0.0, %v925_v46  ;;  %v931_v25 = vand.u32 2147483647, %v1883_v45  ;;  %v820_v62 = vsub.f32 %v1877_v54, %v805_v35  ;;  %v918_v28 = vmin.f32 %v1795_v53, 0.0 }
  0xc6   : > { %v1453_v58 = vpop.eup %1452  ;;  %v946_v61 = vmul.f32 1.442695, %v934_v44  ;;  %v829_v16 = vand.u32 2147483647, %v819_v12  ;;  %v902_v44 = vld [vmem:[#allocation2 + $0x30] sm:$0xff]  ;;  %v903_v12 = vld [vmem:[#allocation2] sm:$0xff] }
  0xc7   : > { %v1455_v1 = vpop.eup %1454  ;;  %v967_v6 = vadd.f32 1.0, %v1453_v58  ;;  %v948_v19 = vmul.f32 1.442695, %v935_v63  ;;  %v941_v23 = vsub.f32 0.0, %v931_v25  ;;  %v916_v53 = vmin.f32 %v1811_v0, 0.0 }
  0xc8   : > { %v1457_v17 = vpop.eup %1456  ;;  %v973_v18 = vmul.f32 0.6931472, %v1455_v1  ;;  %1462 = vpow2.f32 %v946_v61  ;;  %vm1894_vm3 = vcmp.lt.f32.partialorder %v829_v16, 0.5  ;;  %v1046_v61 = vsub.f32 %v1042_v38, %v1044_v42 }
  0xc9   : > { %v1459_v5 = vpop.eup %1458  ;;  %v975_v22 = vmul.f32 0.6931472, %v1457_v17  ;;  %1464 = vlog2.f32 %v967_v6  ;;  %v1903_v49 = vsel %vm1894_vm3, %v1823_v14, %v879_v15  ;;  %v960_v33 = vmul.f32 1.442695, %v941_v23 }
  0xca   : > { %v1461_v24 = vpop.eup %1460  ;;  %v992_v26 = vsub.f32 %v912_v8, %v973_v18  ;;  %v968_v27 = vadd.f32 1.0, %v1459_v5  ;;  %1466 = vpow2.f32 %v948_v19  ;;  %v1911_v8 = vsel %vm1801_vm12, -0.125, %v1514_v37 }
  0xcb   : > { %v993_v35 = vsub.f32 %v913_v47, %v975_v22  ;;  %v966_v32 = vadd.f32 1.0, %v1461_v24  ;;  %v929_v51 = vand.u32 2147483647, %v1903_v49  ;;  %v830_v15 = vand.u32 2147483647, %v820_v62 }
  0xcc   : > { %v1002_v46 = vmul.f32 %v992_v26, %v892_v11  ;;  %1468 = vlog2.f32 %v968_v27  ;;  %v914_v18 = vmin.f32 %v1841_v34, 0.0  ;;  %v915_v19 = vmin.f32 %v1857_v41, 0.0  ;;  %v1043_v34 = vld [vmem:[%s1595_s23 + $0x8] sm:$0xff] }
  0xcd   : > { %v1003_v14 = vmul.f32 %v993_v35, %v893_v40  ;;  %1470 = vlog2.f32 %v966_v32  ;;  %v939_v58 = vsub.f32 0.0, %v929_v51  ;;  %vm1920_vm5 = vcmp.lt.f32.partialorder %v830_v15, 0.5  ;;  %v1045_v26 = vld [vmem:[%s1600_s26 + $0x8] sm:$0xff] }
  0xce   : > { %v1463_v47 = vpop.eup %1462  ;;  %v1012_v11 = vsel %vm842_vm15, %v1002_v46, 0.0  ;;  %1472 = vpow2.f32 %v960_v33  ;;  %v1930_v17 = vsel %vm1920_vm5, %v1830_v20, %v880_v36  ;;  %v1048_v36 = vand.u32 2147483647, %v1046_v61  ;;  %v907_v35 = vld [vmem:[#allocation2 + $0x28] sm:$0xff] }
  0xcf   : > { %v1465_v59 = vpop.eup %1464  ;;  %v1022_v63 = vadd.f32 %v1012_v11, %v902_v44  ;;  %v1013_v1 = vsel %vm843_vm2, %v1003_v14, 0.0  ;;  %v964_v6 = vadd.f32 1.0, %v1463_v47  ;;  %v956_v56 = vmul.f32 1.442695, %v939_v58  ;;  %v1089_v14 = vld [vmem:[#allocation3 + $0x8] sm:$0xff] }
  0xd0   : > { %v1467_v0 = vpop.eup %1466  ;;  %v1023_v25 = vadd.f32 %v1013_v1, %v903_v12  ;;  %v983_v16 = vmul.f32 0.6931472, %v1465_v59  ;;  %v930_v20 = vand.u32 2147483647, %v1930_v17  ;;  %v1052_v24 = vmul.f32 0.5, %v1046_v61 }
  0xd1   : > { %1032 = vst [vmem:[#allocation2 + $0x30] sm:$0xff] %v1022_v63  ;;  %1474 = vlog2.f32 %v964_v6  ;;  %v965_v62 = vadd.f32 1.0, %v1467_v0  ;;  %vm1941_vm9 = vcmp.lt.f32.partialorder %v1048_v36, 1.0  ;;  %v1393_v44 = vadd.f32 -0.5, %v1048_v36  ;;  %v906_v63 = vld [vmem:[#allocation2 + $0x48] sm:$0xff] }
  0xd2   : > { %v1469_v5 = vpop.eup %1468  ;;  %1033 = vst [vmem:[#allocation2] sm:$0xff] %v1023_v25  ;;  %v997_v55 = vsub.f32 %v917_v13, %v983_v16  ;;  %1476 = vpow2.f32 %v956_v56  ;;  %v940_v33 = vsub.f32 0.0, %v930_v20  ;;  %v1054_v42 = vmul.f32 %v1052_v24, %v1046_v61 }
  0xd3   : > { %v1471_v22 = vpop.eup %1470  ;;  %v985_v23 = vmul.f32 0.6931472, %v1469_v5  ;;  %1478 = vlog2.f32 %v965_v62  ;;  %v1047_v15 = vsub.f32 %v1043_v34, %v1045_v26  ;;  %v894_v57 = vsel %vm1835_vm13, -0.125, %v1514_v37 }
  0xd4   : > { %v1473_v27 = vpop.eup %1472  ;;  %v1007_v41 = vmul.f32 %v997_v55, %v1868_v10  ;;  %v981_v32 = vmul.f32 0.6931472, %v1471_v22  ;;  %v958_v12 = vmul.f32 1.442695, %v940_v33  ;;  %v908_v10 = vld [vmem:[#allocation2 + $0x8] sm:$0xff]  ;;  %v1058_v59 = vsel %vm1941_vm9, %v1054_v42, %v1393_v44  ;;  %v1084_v55 = vpop.f32.mrf.mxu1 }
  0xd5   : > { %v998_v13 = vsub.f32 %v918_v28, %v985_v23  ;;  %v971_v38 = vadd.f32 1.0, %v1473_v27  ;;  %v1091_v21 = vsel %vm1087_vm8, %v1058_v59, 0.0  ;;  %v1053_v20 = vmul.f32 0.5, %v1047_v15  ;;  %v905_v27 = vld [vmem:[#allocation2 + $0x10] sm:$0xff] }
  0xd6   : > { %v1017_v46 = vsel %vm847_vm4, %v1007_v41, 0.0  ;;  %v996_v51 = vsub.f32 %v916_v53, %v981_v32  ;;  %v1093_v25 = vadd.f32 %v1091_v21, %v1089_v14  ;;  %vm844_vm11 = vcmp.gt.f32.partialorder %v1805_v60, -0.5  ;;  %v1090_v32 = vld [vmem:[#allocation3] sm:$0xff]  ;;  %v910_v21 = vld [vmem:[#allocation2 + $0x40] sm:$0xff] }
  0xd7   : > { %v1475_v47 = vpop.eup %1474  ;;  %v1027_v11 = vadd.f32 %v1017_v46, %v907_v35  ;;  %v1008_v58 = vmul.f32 %v998_v13, %v1888_v7  ;;  %1480 = vlog2.f32 %v971_v38  ;;  %v1049_v7 = vand.u32 2147483647, %v1047_v15 }
  0xd8   : > { %v1477_v28 = vpop.eup %1476  ;;  %v1006_v61 = vmul.f32 %v996_v51, %v1911_v8  ;;  %v977_v1 = vmul.f32 0.6931472, %v1475_v47  ;;  %1482 = vpow2.f32 %v958_v12  ;;  %1095 = vst [vmem:[#allocation3 + $0x8] sm:$0xff] %v1093_v25  ;;  %v895_v31 = vsel %vm1848_vm14, -0.125, %v1514_v37  ;;  %v911_v51 = vld [vmem:[#allocation2 + $0x38] sm:$0xff] }
  0xd9   : > { %v1479_v53 = vpop.eup %1478  ;;  %1037 = vst [vmem:[#allocation2 + $0x28] sm:$0xff] %v1027_v11  ;;  %v1018_v6 = vsel %vm848_vm6, %v1008_v58, 0.0  ;;  %v969_v0 = vadd.f32 1.0, %v1477_v28  ;;  %vm1959_vm10 = vcmp.lt.f32.partialorder %v1049_v7, 1.0  ;;  %v1394_v30 = vadd.f32 -0.5, %v1049_v7 }
  0xda   : > { %v1028_v16 = vadd.f32 %v1018_v6, %v908_v10  ;;  %v1016_v56 = vsel %vm846_vm7, %v1006_v61, 0.0  ;;  %v994_v62 = vsub.f32 %v914_v18, %v977_v1  ;;  %v979_v5 = vmul.f32 0.6931472, %v1479_v53 }
  0xdb   : > { %v1026_v8 = vadd.f32 %v1016_v56, %v906_v63  ;;  %1484 = vlog2.f32 %v969_v0  ;;  %v1055_v24 = vmul.f32 %v1053_v20, %v1047_v15  ;;  %vm1088_vm12 = vcmp.gt.f32.partialorder %v1084_v55, 0.5 }
  0xdc   : > { %1038 = vst [vmem:[#allocation2 + $0x8] sm:$0xff] %v1028_v16  ;;  %v1004_v36 = vmul.f32 %v994_v62, %v894_v57  ;;  %v995_v22 = vsub.f32 %v915_v19, %v979_v5  ;;  %v921_v19 = vmin.f32 %v1883_v45, 0.0  ;;  %vm845_vm13 = vcmp.gt.f32.partialorder %v1816_v2, -0.5 }
  0xdd   : > { %v1481_v18 = vpop.eup %1480  ;;  %1036 = vst [vmem:[#allocation2 + $0x48] sm:$0xff] %v1026_v8  ;;  %v1059_v60 = vsel %vm1959_vm10, %v1055_v24, %v1394_v30  ;;  %v901_v46 = vsel %vm1870_vm0, -0.125, %v1514_v37  ;;  %v919_v2 = vmin.f32 %v1903_v49, 0.0  ;;  %vm851_vm14 = vcmp.gt.f32.partialorder %v1818_v3, -0.5 }
  0xde   : > { %v1483_v34 = vpop.eup %1482  ;;  %v1014_v26 = vsel %vm844_vm11, %v1004_v36, 0.0  ;;  %v1005_v35 = vmul.f32 %v995_v22, %v895_v31  ;;  %v991_v41 = vmul.f32 0.6931472, %v1481_v18  ;;  %v1092_v38 = vsel %vm1088_vm12, %v1059_v60, 0.0 }
  0xdf   : > { %v1024_v33 = vadd.f32 %v1014_v26, %v904_v29  ;;  %v970_v48 = vadd.f32 1.0, %v1483_v34  ;;  %v1094_v45 = vadd.f32 %v1092_v38, %v1090_v32  ;;  %v899_v10 = vsel %vm1894_vm3, -0.125, %v1514_v37 }
  0xe0   : > { %v1015_v13 = vsel %vm845_vm13, %v1005_v35, 0.0  ;;  %v1001_v39 = vsub.f32 %v921_v19, %v991_v41  ;;  %vm849_vm15 = vcmp.gt.f32.partialorder %v1859_v43, -0.5  ;;  %v920_v49 = vmin.f32 %v1930_v17, 0.0 }
  0xe1   : > { %v1485_v42 = vpop.eup %1484  ;;  %1034 = vst [vmem:[#allocation2 + $0x18] sm:$0xff] %v1024_v33  ;;  %v1025_v44 = vadd.f32 %v1015_v13, %v905_v27  ;;  %1486 = vlog2.f32 %v970_v48  ;;  %v900_v1 = vsel %vm1920_vm5, -0.125, %v1514_v37  ;;  %vm850_vm0 = vcmp.gt.f32.partialorder %v1877_v54, -0.5 }
  0xe2   : > { %v1011_v12 = vmul.f32 %v1001_v39, %v901_v46  ;;  %v987_v14 = vmul.f32 0.6931472, %v1485_v42  ;;  %1096 = vst [vmem:[#allocation3] sm:$0xff] %v1094_v45 }
  0xe3   : > { %1035 = vst [vmem:[#allocation2 + $0x10] sm:$0xff] %v1025_v44 }
  0xe4   : > { %v1021_v15 = vsel %vm851_vm14, %v1011_v12, 0.0  ;;  %v999_v47 = vsub.f32 %v919_v2, %v987_v14 }
  0xe5   : > { %v1031_v11 = vadd.f32 %v1021_v15, %v911_v51 }
  0xe6   : > { %v1009_v58 = vmul.f32 %v999_v47, %v899_v10 }
  0xe7   : > { %v1487_v59 = vpop.eup %1486  ;;  %1041 = vst [vmem:[#allocation2 + $0x38] sm:$0xff] %v1031_v11 }
  0xe8   : > { %v1019_v28 = vsel %vm849_vm15, %v1009_v58, 0.0  ;;  %v989_v63 = vmul.f32 0.6931472, %v1487_v59 }
  0xe9   : > { %v1029_v61 = vadd.f32 %v1019_v28, %v909_v52 }
  0xea   : > { %v1000_v3 = vsub.f32 %v920_v49, %v989_v63 }
  0xeb   : > { %1039 = vst [vmem:[#allocation2 + $0x20] sm:$0xff] %v1029_v61 }
  0xec   : > { %v1010_v50 = vmul.f32 %v1000_v3, %v900_v1 }
  0xed   : > { %1100 = sbr.rel (%p1397_p7) target bundleno = 453 (0x1c5), region = 56 }
  0xee   : > { %v1020_v53 = vsel %vm850_vm0, %v1010_v50, 0.0 }
  0xef   : > { %v1030_v6 = vadd.f32 %v1020_v53, %v910_v21 }
  0xf1   : > { %1040 = vst [vmem:[#allocation2 + $0x40] sm:$0xff] %v1030_v6 }
  0xf2   : > { %v1152_v43 = vld [vmem:[#allocation4] sm:$0xff]  ;;  %v1153_v17 = vld [vmem:[#allocation4 + $0x8] sm:$0xff]  ;;  %v1106_v0 = vld [vmem:[#allocation2 + $0x30] sm:$0xff]  ;;  %v1102_v53 = vand.u32 127, %v608_v4 }
  0xf3   : > { %v1154_v25 = vsel %vm634_vm1, %v1152_v43, 0.0  ;;  %v1155_v7 = vsel %vm634_vm1, %v1153_v17, 0.0  ;;  %v1107_v16 = vld [vmem:[#allocation2] sm:$0xff]  ;;  %v1108_v40 = vld [vmem:[#allocation2 + $0x18] sm:$0xff]  ;;  %v1109_v62 = vld [vmem:[#allocation2 + $0x10] sm:$0xff] }
  0xf4   : > { %v1156_v37 = vadd.f32 %v1155_v7, %v1154_v25  ;;  %v1116_v56 = vadd.f32 %v1107_v16, %v1106_v0  ;;  %v1169_v5 = vld [vmem:[#allocation5] sm:$0xff]  ;;  %v1170_v55 = vld [vmem:[#allocation5 + $0x8] sm:$0xff]  ;;  %v1110_v8 = vld [vmem:[#allocation2 + $0x48] sm:$0xff]  ;;  %vm1104_vm2 = vcmp.eq.s32.totalorder %v1102_v53, 0 }
  0xf5   : > { %v1171_v57 = vsel %vm634_vm1, %v1169_v5, 0.0  ;;  %v1172_v20 = vsel %vm634_vm1, %v1170_v55, 0.0  ;;  %v1111_v36 = vld [vmem:[#allocation2 + $0x28] sm:$0xff]  ;;  %v1113_v31 = vld [vmem:[#allocation2 + $0x20] sm:$0xff]  ;;  %v1115_v27 = vld [vmem:[#allocation2 + $0x38] sm:$0xff]  ;;  %vm1103_vm1 = vcmp.eq.s32.totalorder %v1633_v9, 0 }
  0xf6   : > { %1157 = vadd.xlane.f32.xlu1 %v1156_v37  ;;  %v1117_v54 = vadd.f32 %v1116_v56, %v1108_v40  ;;  %v1173_v23 = vadd.f32 %v1172_v20, %v1171_v57  ;;  %v1112_v30 = vld [vmem:[#allocation2 + $0x8] sm:$0xff]  ;;  %v1137_v41 = vld [vmem:[#allocation3 + $0x8] sm:$0xff]  ;;  %v1138_v32 = vld [vmem:[#allocation3] sm:$0xff] }
  0xf7   : > { %v1139_v33 = vadd.f32 %v1138_v32, %v1137_v41  ;;  %vm1105_vm3 = vmand %vm1103_vm1, %vm1104_vm2 }
  0xf8   : > { %v1118_v29 = vadd.f32 %v1117_v54, %v1109_v62  ;;  %v1114_v34 = vld [vmem:[#allocation2 + $0x40] sm:$0xff] }
  0xfa   : > { %v1119_v22 = vadd.f32 %v1118_v29, %v1110_v8 }
  0xfc   : > { %v1120_v18 = vadd.f32 %v1119_v22, %v1111_v36 }
  0xfe   : > { %v1121_v24 = vadd.f32 %v1120_v18, %v1112_v30  ;;  %1174 = vadd.xlane.f32.xlu1 %v1173_v23 }
 0x100   : > { %v1122_v26 = vadd.f32 %v1121_v24, %v1113_v31 }
 0x102   : > { %v1123_v35 = vadd.f32 %v1122_v26, %v1114_v34 }
 0x104   : > { %v1124_v19 = vadd.f32 %v1123_v35, %v1115_v27 }
 0x106   : > { %1125 = vadd.xlane.f32.xlu0 %v1124_v19 }
 0x10e   : > { %1140 = vadd.xlane.f32.xlu0 %v1139_v33 }
 0x169   : > { %v1158_v48 = vpop.xlane.xlu1 %1157 }
 0x16a   : > { %v1159_v13 = vrot.slane %v1158_v48, 4 }
 0x16c   : > { %v1160_v46 = vadd.f32 %v1159_v13, %v1158_v48 }
 0x16e   : > { %v1161_v2 = vrot.slane %v1160_v46, 2 }
 0x170   : > { %v1162_v58 = vadd.f32 %v1161_v2, %v1160_v46 }
 0x171   : > { %v1175_v60 = vpop.xlane.xlu1 %1174 }
 0x172   : > { %v1176_v42 = vrot.slane %v1175_v60, 4  ;;  %v1163_v63 = vrot.slane %v1162_v58, 1 }
 0x174   : > { %v1177_v51 = vadd.f32 %v1176_v42, %v1175_v60  ;;  %v1164_v21 = vadd.f32 %v1163_v63, %v1162_v58 }
 0x176   : > { %v1178_v15 = vrot.slane %v1177_v51, 2 }
 0x178   : > { %v1179_v59 = vadd.f32 %v1178_v15, %v1177_v51 }
 0x179   : > { %v1126_v39 = vpop.xlane.xlu0 %1125 }
 0x17a   : > { %v1127_v38 = vrot.slane %v1126_v39, 4  ;;  %v1180_v3 = vrot.slane %v1179_v59, 1 }
 0x17c   : > { %v1128_v44 = vadd.f32 %v1127_v38, %v1126_v39  ;;  %v1181_v50 = vadd.f32 %v1180_v3, %v1179_v59 }
 0x17e   : > { %v1129_v45 = vrot.slane %v1128_v44, 2 }
 0x180   : > { %v1130_v12 = vadd.f32 %v1129_v45, %v1128_v44 }
 0x181   : > { %v1141_v14 = vpop.xlane.xlu0 %1140 }
 0x182   : > { %v1142_v47 = vrot.slane %v1141_v14, 4  ;;  %v1131_v11 = vrot.slane %v1130_v12, 1 }
 0x184   : > { %v1143_v10 = vadd.f32 %v1142_v47, %v1141_v14  ;;  %v1132_v52 = vadd.f32 %v1131_v11, %v1130_v12 }
 0x186   : > { %v1144_v28 = vrot.slane %v1143_v10, 2  ;;  %1413 = vpush %v1132_v52 }
 0x188   : > { %v1145_v49 = vadd.f32 %v1144_v28, %v1143_v10 }
 0x18a   : > { %v1146_v61 = vrot.slane %v1145_v49, 1 }
 0x18c   : > { %v1147_v1 = vadd.f32 %v1146_v61, %v1145_v49 }
 0x18e   : > { %1415 = vpush %v1147_v1 }
 0x18f   : > { %1417 = vpush %v1164_v21 }
 0x190   : > { %1419 = vpush %v1181_v50 }
 0x1b7   : > { %s1414_s13 = spop %1413 }
 0x1b8   : > { %v1134_v6 = vstv %s1414_s13 }
 0x1b9   : > { %v1135_v43 = vsel %vm1105_vm3, %v1134_v6, 0.0 }
 0x1ba   : > { %1136 = vst [vmem:[%s2020_s7] sm:$0xff] %v1135_v43 }
 0x1bf   : > { %s1416_s29 = spop %1415 }
 0x1c0   : > { %v1149_v17 = vstv %s1416_s29  ;;  %s1418_s17 = spop %1417 }
 0x1c1   : > { %v1150_v0 = vsel %vm1105_vm3, %v1149_v17, 0.0  ;;  %v1166_v25 = vstv %s1418_s17  ;;  %s1420_s18 = spop %1419 }
 0x1c2   : > { %1151 = vst [vmem:[%s2021_s8] sm:$0xff] %v1150_v0  ;;  %v1167_v4 = vsel %vm1105_vm3, %v1166_v25, 0.0  ;;  %v1183_v9 = vstv %s1420_s18 }
 0x1c3   : > { %1168 = vst [vmem:[%s2022_s9] sm:$0xff] %v1167_v4  ;;  %v1184_v7 = vsel %vm1105_vm3, %v1183_v9, 0.0 }
 0x1c4   : > { %1185 = vst [vmem:[%s2023_s10] sm:$0xff] %v1184_v7 }
 0x1c5 PF: > { %s21_s15 = sadd.s32 1, %s1510_s15   ;;  %s2048_s13 = smov %s1506_s14 }
 0x1c6   : > { %p18_p8 = scmp.ge.s32.totalorder %s21_s15, 7   ;;  %s2049_s14 = smov %s2051_s16 }
 0x1c8   :  { %20 = sbr.rel (!%p18_p8) target bundleno = 2 (0x2), region = 131 }

</bundles_post_ra>
